<compile_context>
chip_gen: v5e
topology: v5e:2x2
jax: 0.10.0
libtpu: 0.0.40
codegen_flags: <defaults>
</compile_context>

<pallas_src>
import jax
import jax.numpy as jnp
from jax.experimental import pallas as pl
from jax.experimental.pallas import tpu as pltpu


def _dynamic_pad_kernel(x_ref, o_ref):
    # x_ref: (Nt, H,  W )   one slab of collapsed batch*channel images
    # o_ref: (Nt, Hp, Wp)
    Nt, H, W = x_ref.shape
    _, Hp, Wp = o_ref.shape

    # Body copy (top-left corner of every image), written exactly once.
    o_ref[:, :H, :W] = x_ref[...]

    # Right zero strip: rows [0, H), cols [W, Wp).
    if Wp > W:
        o_ref[:, :H, W:] = jnp.zeros((Nt, H, Wp - W), o_ref.dtype)

    # Bottom zero strip: rows [H, Hp), all cols (lane-dense full-width store).
    if Hp > H:
        o_ref[:, H:, :] = jnp.zeros((Nt, Hp - H, Wp), o_ref.dtype)


def _choose_tile(N, H, W, Hp, Wp, itemsize, vmem_budget_bytes=8 << 20):
    """Pick a leading-axis tile Nt such that the double-buffered input+output
    slabs stay within a conservative VMEM budget (safe for v5e/v6e/v7x default
    scoped-VMEM limits), while keeping >= 2 grid steps when N >= 2 so both
    v7x TensorCores get work on the "parallel" grid axis."""
    per_image = (H * W + Hp * Wp) * itemsize
    nt = max(1, vmem_budget_bytes // max(1, 2 * per_image))  # 2x: double-buffer
    nt = min(nt, N)
    if N >= 2:
        nt = min(nt, max(1, N // 2))   # leave at least 2 parallel grid steps
    while N % nt:                      # require full blocks (no partial tiles)
        nt -= 1
    return nt


def dynamic_pad(x: jax.Array, stride_product: int) -> jax.Array:
    """Pads bottom and right of an NCHW tensor with zeros; matches
    DynamicPadLayer.forward (padding amount derived from H only)."""
    B, C, H, W = x.shape
    p = stride_product - (H % stride_product)   # PyTorch module semantics
    Hp, Wp = H + p, W + p

    # Collapse batch & channel: free reshape on contiguous NCHW layout.
    N = B * C
    x3 = x.reshape(N, H, W)

    itemsize = jnp.dtype(x.dtype).itemsize
    nt = _choose_tile(N, H, W, Hp, Wp, itemsize)
    grid = (N // nt,)

    bytes_accessed = (N * H * W + N * Hp * Wp) * itemsize

    out3 = pl.pallas_call(
        _dynamic_pad_kernel,
        out_shape=jax.ShapeDtypeStruct((N, Hp, Wp), x.dtype),
        grid=grid,
        in_specs=[
            # Full spatial extent per tile; the block's trailing dims equal the
            # full array dims, so the (8,128) divisibility rule is satisfied
            # for any H/W.
            pl.BlockSpec((nt, H, W), lambda i: (i, 0, 0)),
        ],
        out_specs=pl.BlockSpec((nt, Hp, Wp), lambda i: (i, 0, 0)),
        cost_estimate=pl.CostEstimate(
            flops=0, transcendentals=0, bytes_accessed=bytes_accessed),
        compiler_params=pltpu.CompilerParams(
            dimension_semantics=("parallel",),
        ),
    )(x3)

    return out3.reshape(B, C, Hp, Wp)


def dynamic_pad_reference(x: jax.Array, stride_product: int) -> jax.Array:
    """Pure-JAX reference matching torch.nn.functional.pad(x, (0, p, 0, p))."""
    H = x.shape[2]
    p = stride_product - (H % stride_product)
    return jnp.pad(x, ((0, 0), (0, 0), (0, p), (0, p)))


if __name__ == "__main__":
    key = jax.random.PRNGKey(0)
    B, C, H, W = 2, 4, 16, 16
    stride_product = 8  # e.g. 3 down-sampling layers of stride 2
    x = jax.random.normal(key, (B, C, H, W), dtype=jnp.float32)

    out = dynamic_pad(x, stride_product)
    out = jax.block_until_ready(out)

    ref = dynamic_pad_reference(x, stride_product)
    assert out.shape == ref.shape, (out.shape, ref.shape)
    assert jnp.array_equal(out, ref), "Pallas output mismatch vs reference"

    print("KERNEL_OK")
</pallas_src>

<mosaic_0001>
module attributes {stable_mosaic.version = 11 : i64} {
  func.func @_dynamic_pad_kernel(%arg0: i32, %arg1: memref<4x16x16xf32, #tpu.memory_space<vmem>>, %arg2: memref<4x24x24xf32, #tpu.memory_space<vmem>>) attributes {dimension_semantics = [#tpu.dimension_semantics<parallel>], iteration_bounds = array<i64: 2>, scalar_prefetch = 0 : i64, scratch_operands = 0 : i64, tpu.core_type = #tpu.core_type<tc>, window_params = [{transform_indices = @transform_0, window_bounds = array<i64: 4, 16, 16>}, {transform_indices = @transform_1, window_bounds = array<i64: 4, 24, 24>}]} {
    %c0 = arith.constant 0 : index
    %c0_0 = arith.constant 0 : index
    %c0_1 = arith.constant 0 : index
    %0 = vector.load %arg1[%c0, %c0_0, %c0_1] : memref<4x16x16xf32, #tpu.memory_space<vmem>>, vector<4x16x16xf32>
    %c0_2 = arith.constant 0 : index
    %c0_3 = arith.constant 0 : index
    %c0_4 = arith.constant 0 : index
    %1 = vector.load %arg2[%c0_2, %c0_3, %c0_4] : memref<4x24x24xf32, #tpu.memory_space<vmem>>, vector<4x16x16xf32>
    tpu.vector_store %arg2[%c0_2, %c0_3, %c0_4], %0 {strides = array<i32>} : memref<4x24x24xf32, #tpu.memory_space<vmem>>, vector<4x16x16xf32>,
    %cst = arith.constant 0.000000e+00 : f32
    %2 = vector.broadcast %cst : f32 to vector<4x16x8xf32>
    %c0_5 = arith.constant 0 : index
    %c0_6 = arith.constant 0 : index
    %c16 = arith.constant 16 : index
    %3 = vector.load %arg2[%c0_5, %c0_6, %c16] : memref<4x24x24xf32, #tpu.memory_space<vmem>>, vector<4x16x8xf32>
    tpu.vector_store %arg2[%c0_5, %c0_6, %c16], %2 {strides = array<i32>} : memref<4x24x24xf32, #tpu.memory_space<vmem>>, vector<4x16x8xf32>,
    %cst_7 = arith.constant 0.000000e+00 : f32
    %4 = vector.broadcast %cst_7 : f32 to vector<4x8x24xf32>
    %c0_8 = arith.constant 0 : index
    %c16_9 = arith.constant 16 : index
    %c0_10 = arith.constant 0 : index
    %5 = vector.load %arg2[%c0_8, %c16_9, %c0_10] : memref<4x24x24xf32, #tpu.memory_space<vmem>>, vector<4x8x24xf32>
    tpu.vector_store %arg2[%c0_8, %c16_9, %c0_10], %4 {strides = array<i32>} : memref<4x24x24xf32, #tpu.memory_space<vmem>>, vector<4x8x24xf32>,
    return
  }
  func.func @transform_0(%arg0: i32) -> (i32, i32, i32) {
    %c0_i32 = arith.constant 0 : i32
    %c0_i32_0 = arith.constant 0 : i32
    %c0_i32_1 = arith.constant 0 : i32
    return %arg0, %c0_i32, %c0_i32_0 : i32, i32, i32
  }
  func.func @transform_1(%arg0: i32) -> (i32, i32, i32) {
    %c0_i32 = arith.constant 0 : i32
    %c0_i32_0 = arith.constant 0 : i32
    %c0_i32_1 = arith.constant 0 : i32
    return %arg0, %c0_i32, %c0_i32_0 : i32, i32, i32
  }
}

</mosaic_0001>

<bundles_post_ra>
// kernel: tpu_custom_call.1
= control target key start
LH: loop header
LB: loop body
LE: loop exit
PB: predicated region body
PF: predicated region fallthrough
CT: control target
= control target key end

     0   :  { %6 = vsyncpa [#allocation3], 0  ;;  %s602_s0 = inlined_call_operand.hbm [shape: f32[8,16,16], index: 0, kind: input, shape index: {}]   ;;  %s603_s1 = inlined_call_operand.hbm [shape: f32[8,24,24], index: 1, kind: output, shape index: {}]  }
   0x1   :  { %8 = vsyncpa [#allocation3 + $0x1], 0 }
   0x2   :  { %9 = vsyncpa [#allocation4], 0 }
   0x3   :  { %11 = vsyncpa [#allocation4 + $0x1], 0  ;;  %s443_s6 = smov 0   ;;  %s445_s7 = smov 0  }
   0x4   :  { %s447_s8 = smov 0   ;;  %s449_s9 = smov 0  }
   0x5 LB: > { %s464_s10 = sadd.s32 4294967295, %s426_s9   ;;  %s261_s11 = sadd.s32 4294967294, %s426_s9   ;;  %s426_s9 = sphi %s449_s9, %s613_s9   ;;  %s422_s8 = sphi %s447_s8, %s612_s8   ;;  %s418_s7 = sphi %s445_s7, %s611_s7   ;;  %s414_s6 = sphi %s443_s6, %s610_s6  }
   0x6   : > { %s468_s12 = sadd.s32 1, %s426_s9   ;;  %s24_s13 = sadd.s32 1, %s422_s8 }
   0x7   : > { %s21_s14 = ssub.s32 %s426_s9, %s468_s12  ;;  %p31_p0 = scmp.ne.s32.totalorder %s422_s8, %s418_s7 }
   0x8   : > { %p22_p1 = scmp.eq.s32.totalorder %s21_s14, 0  ;;  %p32_p2 = scmp.eq.s32.totalorder %s426_s9, 0 }
   0x9   : > { %p37_p3 = scmp.ne.s32.totalorder %s418_s7, %s414_s6  ;;  %p38_p4 = scmp.eq.s32.totalorder %s464_s10, 0 }
   0xa   : > { %s480_s15 = scalar_select %p22_p1, %s422_s8, %s24_s13  }
   0xb   : > { %p482_p5 = por %p32_p2, %p31_p0  ;;  %p486_p6 = por %p38_p4, %p37_p3 }
   0xc   : > { %p61_p7 = scmp.eq.s32.totalorder %s464_s10, 1  ;;  %p67_p8 = scmp.eq.s32.totalorder %s261_s11, 1 }
   0xd   : > { %p291_p10 = scmp.lt.s32.totalorder %s426_s9, 2  ;;  %s87_s20 = sand.u32 1, %s422_s8  }
   0xe   : > { %p493_p11 = por %p61_p7, %p31_p0  ;;  %p497_p12 = por %p67_p8, %p37_p3 }
   0xf   : > { %s276_s21 = sshll.u32 %s426_s9, 6  ;;  %s264_s22 = sshll.u32 %s87_s20, 6 }
  0x10   : > { %s97_s25 = scalar_lea.hbm %s602_s0, %s276_s21  ;;  %s91_s27 = scalar_lea.vmem [#allocation2], %s264_s22 }
  0x11   : > { %s98_s26 = sshll.u32 %s97_s25, 4  ;;  %s100_s28 = sshll.u32 %s91_s27, 4  ;;  %s99_s26 = int_to_ptr.hbm [resolvable:$true] %s98_s26  ;;  %s101_s28 = int_to_ptr.vmem [resolvable:$true] %s100_s28 }
  0x12   : > { %p508_p13 = pnand %p291_p10, %p482_p5  ;;  %p268_p0 = scmp.ge.s32.totalorder %s426_s9, 1 }
  0x13   : > { %p108_p1 = scmp.lt.s32.totalorder %s426_s9, 3  ;;  %s88_s30 = scalar_lea.sflag [#allocation3], %s87_s20 }
  0x14   : > { %s330_s2 = sshra.s32 %s99_s26, 4  ;;  %p334_p3 = pneg %p508_p13  ;;  %s331_s2 = int_to_ptr.hbm [resolvable:$true] %s330_s2 }
  0x15   : > { %s332_s3 = scalar_lea.hbm %s331_s2, 64  ;;  %s337_s11 = scalar_lea.hbm %s602_s0, 128 }
  0x16   : > { %p333_p2 = scmp.ne.s32.totalorder %s331_s2, %s332_s3  ;;  %p338_p5 = scmp.lt.s32.totalorder %s331_s2, %s602_s0 }
  0x17   : > { %p339_p8 = scmp.lt.s32.totalorder %s337_s11, %s332_s3 }
  0x18   : > { %p335_p4 = pnand %p334_p3, %p333_p2 }
  0x19   : > { %p340_p10 = por %p339_p8, %p338_p5 }
  0x1a   : > { %p336_p7 = pneg %p335_p4 }
  0x1c   : > { %p341_p9 = pnand %p340_p10, %p336_p7 }
  0x1e   : > { %344 = shalt.err (!%p341_p9)
}
  0x1f   : > { %s428_s16 = smov 128   ;;  %s429_s20 = smov 8  }
  0x20   : > { %286 = dma.hbm_to_vmem [thread:$0]  (!%p508_p13), %s99_s26, 1024, %s101_s28, %s88_s30, %s428_s16, %s428_s16, %s429_s20  }
  0x21   : > { %p109_p2 = pnand %p268_p0, %p108_p1 }
  0x22   : > { %s529_s21 = sand.u32 (!%p109_p2), 1, %s418_s7  }
  0x23   : > { %112 = sbr.rel (%p109_p2) target bundleno = 67 (0x43), region = 24  ;;  %s269_s22 = sshll.u32 (!%p109_p2), %s529_s21, 6 }
  0x24   : > { %s115_s23 = scalar_lea.sflag (!%p109_p2), [#allocation3], %s529_s21  ;;  %s118_s24 = scalar_lea.vmem (!%p109_p2), [#allocation2], %s269_s22 }
  0x28   : > { %405 = dma.done.wait (%p486_p6), %s115_s23, 1024  }
  0x29   : > { %407 = vsyncadd (%p486_p6), %s115_s23, 4294966272  ;;  %s277_s25 = smul.u32 96, %s529_s21  ;;  %vm166_vm0 = vcmask 195584   ;;  %v430_v0 = vmov 0.0   ;;  %vm148_vm1 = vcmask 130048   ;;  %v140_v1 = vld [vmem:[%s118_s24] sm:$0xff] }
  0x2a   : > { %v141_v2 = vld [vmem:[%s118_s24 + $0x8] sm:$0xff]  ;;  %v142_v3 = vld [vmem:[%s118_s24 + $0x10] sm:$0xff]  ;;  %v143_v4 = vld [vmem:[%s118_s24 + $0x18] sm:$0xff]  ;;  %s278_s17 = smul.u32 96, %s464_s10  ;;  %vm157_vm2 = vcmask 195712   ;;  %s172_s2 = scalar_lea.sflag [#allocation4], %s529_s21 }
  0x2b   : > { %s538_s26 = scalar_lea.vmem [#allocation5], %s277_s25  ;;  %v144_v5 = vld [vmem:[%s118_s24 + $0x20] sm:$0xff]  ;;  %v145_v6 = vld [vmem:[%s118_s24 + $0x28] sm:$0xff]  ;;  %v146_v7 = vld [vmem:[%s118_s24 + $0x30] sm:$0xff]  ;;  %s380_s13 = scalar_lea.hbm %s603_s1, 192 }
  0x2c   : > { %167 = vst.msk [vmem:[%s538_s26 + $0x10] sm:$0xff] %vm166_vm0, %v430_v0  ;;  %v147_v8 = vld [vmem:[%s118_s24 + $0x38] sm:$0xff]  ;;  %s184_s29 = scalar_lea.hbm %s603_s1, %s278_s17  ;;  %s185_s10 = sshll.u32 %s538_s26, 4  ;;  %s186_s10 = int_to_ptr.vmem [resolvable:$true] %s185_s10 }
  0x2d   : > { %168 = vst.msk [vmem:[%s538_s26 + $0x28] sm:$0xff] %vm166_vm0, %v430_v0  ;;  %s187_s30 = sshll.u32 %s184_s29, 4  ;;  %s188_s30 = int_to_ptr.hbm [resolvable:$true] %s187_s30 }
  0x2e   : > { %169 = vst.msk [vmem:[%s538_s26 + $0x40] sm:$0xff] %vm166_vm0, %v430_v0  ;;  %s374_s3 = sshra.s32 %s188_s30, 4  ;;  %s375_s3 = int_to_ptr.hbm [resolvable:$true] %s374_s3 }
  0x2f   : > { %170 = vst.msk [vmem:[%s538_s26 + $0x58] sm:$0xff] %vm166_vm0, %v430_v0  ;;  %s376_s4 = scalar_lea.hbm %s375_s3, 96  ;;  %p381_p0 = scmp.lt.s32.totalorder %s375_s3, %s603_s1 }
  0x30   : > { %149 = vst.msk [vmem:[%s538_s26] sm:$0xff] %vm148_vm1, %v140_v1  ;;  %p377_p6 = scmp.ne.s32.totalorder %s375_s3, %s376_s4  ;;  %p382_p1 = scmp.lt.s32.totalorder %s380_s13, %s376_s4 }
  0x31   : > { %150 = vst.msk [vmem:[%s538_s26 + $0x8] sm:$0xff] %vm148_vm1, %v141_v2 }
  0x32   : > { %151 = vst.msk [vmem:[%s538_s26 + $0x18] sm:$0xff] %vm148_vm1, %v142_v3  ;;  %p378_p9 = pnand %p377_p6, %p493_p11  ;;  %p383_p3 = por %p382_p1, %p381_p0 }
  0x33   : > { %152 = vst.msk [vmem:[%s538_s26 + $0x20] sm:$0xff] %vm148_vm1, %v143_v4 }
  0x34   : > { %153 = vst.msk [vmem:[%s538_s26 + $0x30] sm:$0xff] %vm148_vm1, %v144_v5  ;;  %p379_p13 = pneg %p378_p9 }
  0x35   : > { %154 = vst.msk [vmem:[%s538_s26 + $0x38] sm:$0xff] %vm148_vm1, %v145_v6 }
  0x36   : > { %155 = vst.msk [vmem:[%s538_s26 + $0x48] sm:$0xff] %vm148_vm1, %v146_v7  ;;  %p384_p4 = pnand %p383_p3, %p379_p13 }
  0x37   : > { %156 = vst.msk [vmem:[%s538_s26 + $0x50] sm:$0xff] %vm148_vm1, %v147_v8 }
  0x38   : > { %158 = vst.msk [vmem:[%s538_s26] sm:$0xff] %vm157_vm2, %v430_v0 }
  0x39   : > { %159 = vst.msk [vmem:[%s538_s26 + $0x8] sm:$0xff] %vm157_vm2, %v430_v0 }
  0x3a   : > { %160 = vst.msk [vmem:[%s538_s26 + $0x18] sm:$0xff] %vm157_vm2, %v430_v0 }
  0x3b   : > { %161 = vst.msk [vmem:[%s538_s26 + $0x20] sm:$0xff] %vm157_vm2, %v430_v0 }
  0x3c   : > { %162 = vst.msk [vmem:[%s538_s26 + $0x30] sm:$0xff] %vm157_vm2, %v430_v0 }
  0x3d   : > { %163 = vst.msk [vmem:[%s538_s26 + $0x38] sm:$0xff] %vm157_vm2, %v430_v0 }
  0x3e   : > { %164 = vst.msk [vmem:[%s538_s26 + $0x48] sm:$0xff] %vm157_vm2, %v430_v0 }
  0x3f   : > { %165 = vst.msk [vmem:[%s538_s26 + $0x50] sm:$0xff] %vm157_vm2, %v430_v0 }
  0x40   : > { %387 = shalt.err (!%p384_p4)
}
  0x41   : > { %s431_s20 = smov 128   ;;  %s432_s21 = smov 8  }
  0x42   : > { %281 = dma.vmem_to_hbm [thread:$0]  (%p493_p11), %s186_s10, 1536, %s188_s30, %s172_s2, %s431_s20, %s431_s20, %s432_s21  }
  0x43 PF: > { %s202_s22 = sand.u32 1, %s414_s6   ;;  %p609_p7 = scmp.ge.s32.totalorder %s426_s9, 2 }
  0x44   : > { %s203_s23 = scalar_lea.sflag [#allocation4], %s202_s22 }
  0x45   : > { %p288_p5 = pnand %p609_p7, %p497_p12 }
  0x47   : > { %p289_p8 = pneg %p288_p5 }
  0x49   : > { %409 = dma.done.wait (%p289_p8), %s203_s23, 1536  }
  0x4a   : > { %411 = vsyncadd (%p289_p8), %s203_s23, 4294965760  ;;  %p14_p10 = scmp.ge.s32.totalorder %s468_s12, 4   ;;  %s610_s6 = smov %s418_s7 }
  0x4b   : > { %s611_s7 = smov %s422_s8  ;;  %s612_s8 = smov %s480_s15 }
  0x4c   : > { %s613_s9 = smov %s468_s12  ;;  %16 = sbr.rel (!%p14_p10) target bundleno = 5 (0x5), region = 69 }
  0x51   :  { %209 = vsyncpa [#allocation3], 1 }
  0x52   :  { %211 = vsyncpa [#allocation3 + $0x1], 1 }
  0x53   :  { %212 = vsyncpa [#allocation4], 1 }
  0x54   :  { %214 = vsyncpa [#allocation4 + $0x1], 1 }

</bundles_post_ra>
